<compile_context>
chip_gen: v5e
topology: v5e:2x2
jax: 0.10.0
libtpu: 0.0.40
codegen_flags: <defaults>
</compile_context>

<pallas_src>
import functools

import jax
import jax.numpy as jnp
from jax.experimental import pallas as pl
from jax.experimental.pallas import tpu as pltpu

# --- module config (PyTorch defaults) ---------------------------------------
KT, KF = 2, 3          # kernel_size
DT, DF = 1, 1          # dilation
PAD_T = DT * (KT - 1) // 2   # = 0   (non-causal)
PAD_F = DF * (KF - 1) // 2   # = 1
EPS = 1e-5             # GroupNorm eps

# columns of the packed per-channel parameter array `vecs` (mid, 5 + KT*KF)
_B1, _G1, _BOG, _BD, _ALPHA, _WD0 = 0, 1, 2, 3, 4, 5
# rows of the precomputed f32 mask array `masks` (4, TFp)
_MSK_IN, _MSK_FM1, _MSK_FP1, _MSK_OUT = 0, 1, 2, 3


def tcn_blk_kernel(x_ref, w1_ref, vecs_ref, masks_ref, w2_ref, b2aux_ref, o_ref,
                   *, F, T, Tout):
    # x_ref block: (1, Cin, TFp) -- one batch element, flat (t, f) lane axis.
    x = x_ref[0]                               # (Cin, TFp)
    TFp = x.shape[1]
    mid = w1_ref.shape[0]

    v = vecs_ref[...]                          # (mid, 5 + KT*KF) packed params
    b1 = v[:, _B1:_B1 + 1]
    g1 = v[:, _G1:_G1 + 1]
    bog = v[:, _BOG:_BOG + 1]                  # be1 / g1 (precomputed)
    bd = v[:, _BD:_BD + 1]
    alpha = v[:, _ALPHA:_ALPHA + 1]            # single PReLU param, replicated

    in_valid = masks_ref[_MSK_IN:_MSK_IN + 1, :]      # lane < T*F
    f_masks = {0: masks_ref[_MSK_FM1:_MSK_FM1 + 1, :],   # f-1 in range
               2: masks_ref[_MSK_FP1:_MSK_FP1 + 1, :]}   # f+1 in range
    out_valid = masks_ref[_MSK_OUT:_MSK_OUT + 1, :]      # t < Tout

    # ---- up_channel: 1x1 conv (MXU matmul) + PReLU ---------------------------
    y = jnp.dot(w1_ref[...], x, preferred_element_type=jnp.float32) + b1
    y = jnp.where(y > 0, y, alpha * y)

    # ---- GroupNorm(1, mid) #1 stats: sublane reduce on the MXU,
    #      lane-validity mask applied on the tiny (1, TFp) column sums.
    ones_row = jnp.ones((1, mid), jnp.float32)
    cs1 = jnp.dot(ones_row, y, preferred_element_type=jnp.float32)       # (1,TFp)
    cs2 = jnp.dot(ones_row, y * y, preferred_element_type=jnp.float32)   # (1,TFp)
    n1 = float(mid * T * F)
    mu1 = jnp.sum(cs1 * in_valid) / n1
    # single-pass E[x^2]-E[x]^2 variance (fp32, guarded against cancellation)
    var1 = jnp.maximum(jnp.sum(cs2 * in_valid) / n1 - mu1 * mu1, 0.0)
    inv1 = jax.lax.rsqrt(var1 + EPS)
    std1 = (var1 + EPS) * inv1                 # sqrt(var1 + eps)

    # GN1 as an add-only shift; the GN1 scale (g1*inv1) is folded into the
    # six O(mid)-sized depthwise taps (effectively free).
    yp = y + (bog * std1 - mu1)                # (mid, TFp)
    taps = v[:, _WD0:_WD0 + KT * KF] * (g1 * inv1)    # (mid, KT*KF)

    # ---- depthwise (KT, KF) conv: 3 lane rolls + f32 mask multiplies --------
    # Flat lane index n = t*F + f; tap (i, j) reads source n + i*F + (j-PAD_F).
    # Accumulate S0 (t row) and S1 (t+1 row) over the f-taps, then a single
    # roll of S1 by -F.  No `base` list is materialized.
    s0 = None
    s1 = None
    for j in range(KF):
        dj = j * DF - PAD_F
        if dj == 0:
            yj = yp
        else:
            # zero-pad behaviour at F edges via a precomputed f32 mask
            yj = pltpu.roll(yp, shift=(-dj) % TFp, axis=1) * f_masks[j]
        t0 = taps[:, j:j + 1]
        t1 = taps[:, KF + j:KF + j + 1]
        s0 = t0 * yj if s0 is None else s0 + t0 * yj
        s1 = t1 * yj if s1 is None else s1 + t1 * yj
    acc = (s0 + bd) + pltpu.roll(s1, shift=(TFp - DT * F) % TFp, axis=1)

    # ---- GroupNorm #2 stats over the valid Tout*F columns only --------------
    ca1 = jnp.dot(ones_row, acc, preferred_element_type=jnp.float32)
    ca2 = jnp.dot(ones_row, acc * acc, preferred_element_type=jnp.float32)
    n2 = float(mid * Tout * F)
    mu2 = jnp.sum(ca1 * out_valid) / n2
    var2 = jnp.maximum(jnp.sum(ca2 * out_valid) / n2 - mu2 * mu2, 0.0)
    inv2 = jax.lax.rsqrt(var2 + EPS)

    # ---- post: 1x1 conv (MXU) with GN2 normalization + affine folded through.
    # out = w2 @ ((acc - mu2) * inv2) + b2  ==  inv2*(w2@acc) + (b2 - mu2*inv2*rowsum(w2))
    m = jnp.dot(w2_ref[...], acc, preferred_element_type=jnp.float32)   # (Cout,TFp)
    b2eff = b2aux_ref[:, 0:1] - (mu2 * inv2) * b2aux_ref[:, 1:2]        # (Cout,1)
    o_ref[0] = (inv2 * m + b2eff).astype(o_ref.dtype)


def tcn_blk(x_nchw, params):
    """x_nchw: (B, Cin, T, F) float32 -> (B, Cout, T-1, F) float32."""
    B, Cin, T, F = x_nchw.shape
    mid = params["w1t"].shape[1]
    Cout = params["w2t"].shape[1]
    Tout = T + 2 * PAD_T - DT * (KT - 1)
    TF, ToutF = T * F, Tout * F
    TFp = ((TF + 127) // 128) * 128            # lane axis padded to 128-multiple

    # Free (row-major) reshape; zero-pad the lane axis if needed.
    x_flat = x_nchw.reshape(B, Cin, TF)
    if TFp != TF:
        x_flat = jnp.pad(x_flat, ((0, 0), (0, 0), (0, TFp - TF)))

    # --- tiny parameter prep (once per call, O(mid)/O(Cout) work) -------------
    w1 = params["w1t"].T                                          # (mid, Cin)
    # packed per-mid-channel vectors: b1, g1, be1/g1, bd, alpha, 6 raw taps
    # (assumes g1 != 0, as for any trained GroupNorm affine)
    vecs = jnp.concatenate(
        [params["b1"].T, params["g1"].T, (params["be1"] / params["g1"]).T,
         params["bd"].T, jnp.broadcast_to(params["alpha"], (mid, 1)),
         params["wd"].T], axis=1)                                 # (mid, 11)
    # fold the post-GroupNorm affine (g2, be2) into the output 1x1 conv
    w2 = (params["g2"][0][:, None] * params["w2t"]).T             # (Cout, mid)
    b2 = (params["b2"][0] + params["be2"][0] @ params["w2t"])[:, None]  # (Cout,1)
    b2aux = jnp.concatenate([b2, jnp.sum(w2, axis=1, keepdims=True)], axis=1)

    # precomputed f32 masks (lane-validity, f-edge for the two shifted taps,
    # and the valid Tout region for GN2 stats) -- multiplies, no compares in-kernel
    lane = jnp.arange(TFp, dtype=jnp.int32)
    f_idx, t_idx = lane % F, lane // F
    masks = jnp.stack([
        (lane < TF).astype(jnp.float32),
        (f_idx >= PAD_F).astype(jnp.float32),
        (f_idx < F - PAD_F).astype(jnp.float32),
        (t_idx < Tout).astype(jnp.float32),
    ], axis=0)                                                    # (4, TFp)

    # explicit scoped-VMEM limit sized to the real per-step working set
    # (~8 live (mid,TFp) f32 arrays + double-buffered in/out blocks), with
    # headroom, capped at 64 MiB so it is valid on v7x too.
    est = 4 * TFp * (8 * mid + 4 * Cin + 4 * Cout + 16)
    vmem_limit = int(min(max(2 * est + (4 << 20), 32 << 20), 64 << 20))

    kernel = functools.partial(tcn_blk_kernel, F=F, T=T, Tout=Tout)
    out_flat = pl.pallas_call(
        kernel,
        out_shape=jax.ShapeDtypeStruct((B, Cout, TFp), jnp.float32),
        grid=(B,),
        in_specs=[
            pl.BlockSpec((1, Cin, TFp), lambda b: (b, 0, 0)),
            pl.BlockSpec((mid, Cin), lambda b: (0, 0)),
            pl.BlockSpec((mid, 5 + KT * KF), lambda b: (0, 0)),
            pl.BlockSpec((4, TFp), lambda b: (0, 0)),
            pl.BlockSpec((Cout, mid), lambda b: (0, 0)),
            pl.BlockSpec((Cout, 2), lambda b: (0, 0)),
        ],
        out_specs=pl.BlockSpec((1, Cout, TFp), lambda b: (b, 0, 0)),
        compiler_params=pltpu.CompilerParams(
            dimension_semantics=("parallel",),
            vmem_limit_bytes=vmem_limit),
    )(x_flat, w1, vecs, masks, w2, b2aux)

    # slice the padded / invalid lane tail off in JAX, then free reshape
    return out_flat[:, :, :ToutF].reshape(B, Cout, Tout, F)


def tcn_blk_reference(x_nchw, p):
    """Pure-JAX reference (same math as the PyTorch module)."""
    B = x_nchw.shape[0]
    x = jnp.transpose(x_nchw, (0, 2, 3, 1))                  # (B, T, F, Cin)
    T, F = x.shape[1], x.shape[2]
    mid = p["w1t"].shape[1]
    Tout = T + 2 * PAD_T - DT * (KT - 1)

    y = jnp.einsum("btfc,cm->btfm", x, p["w1t"]) + p["b1"][0]
    y = jnp.where(y > 0, y, p["alpha"][0, 0] * y)
    mu = jnp.mean(y, axis=(1, 2, 3), keepdims=True)
    var = jnp.mean((y - mu) ** 2, axis=(1, 2, 3), keepdims=True)
    y = (y - mu) / jnp.sqrt(var + EPS) * p["g1"][0] + p["be1"][0]

    yp = jnp.pad(y, ((0, 0), (PAD_T, PAD_T), (PAD_F, PAD_F), (0, 0)))
    acc = jnp.zeros((B, Tout, F, mid), jnp.float32) + p["bd"][0]
    for i in range(KT):
        for j in range(KF):
            acc = acc + p["wd"][i * KF + j] * yp[:, i * DT:i * DT + Tout,
                                                 j * DF:j * DF + F, :]

    mu2 = jnp.mean(acc, axis=(1, 2, 3), keepdims=True)
    var2 = jnp.mean((acc - mu2) ** 2, axis=(1, 2, 3), keepdims=True)
    z = (acc - mu2) / jnp.sqrt(var2 + EPS) * p["g2"][0] + p["be2"][0]
    out = jnp.einsum("btfm,mo->btfo", z, p["w2t"]) + p["b2"][0]
    return jnp.transpose(out, (0, 3, 1, 2))


def make_params(key, in_channels, mid_channels, out_channels):
    ks = jax.random.split(key, 10)
    f32 = jnp.float32
    return {
        # Conv2d(Cin, mid, 1) weight, stored transposed: (Cin, mid)
        "w1t":   (0.3 * jax.random.normal(ks[0], (in_channels, mid_channels))).astype(f32),
        "b1":    (0.1 * jax.random.normal(ks[1], (1, mid_channels))).astype(f32),
        # PReLU single parameter (PyTorch init = 0.25)
        "alpha": jnp.full((1, 1), 0.25, f32),
        # GroupNorm(1, mid) affine
        "g1":    (1.0 + 0.1 * jax.random.normal(ks[2], (1, mid_channels))).astype(f32),
        "be1":   (0.1 * jax.random.normal(ks[3], (1, mid_channels))).astype(f32),
        # depthwise Conv2d weight (mid,1,KT,KF) stored as (KT*KF, mid)
        "wd":    (0.3 * jax.random.normal(ks[4], (KT * KF, mid_channels))).astype(f32),
        "bd":    (0.1 * jax.random.normal(ks[5], (1, mid_channels))).astype(f32),
        # GroupNorm(1, mid) affine
        "g2":    (1.0 + 0.1 * jax.random.normal(ks[6], (1, mid_channels))).astype(f32),
        "be2":   (0.1 * jax.random.normal(ks[7], (1, mid_channels))).astype(f32),
        # Conv2d(mid, Cout, 1) weight, stored transposed: (mid, Cout)
        "w2t":   (0.3 * jax.random.normal(ks[8], (mid_channels, out_channels))).astype(f32),
        "b2":    (0.1 * jax.random.normal(ks[9], (1, out_channels))).astype(f32),
    }


if __name__ == "__main__":
    key = jax.random.PRNGKey(0)
    # (B, Cin, T, F, mid, Cout): first case T*F = 128 (aligned lane axis),
    # second case T*F = 144 (exercises the padded-lane path).
    cases = [(2, 4, 8, 16, 32, 4),
             (1, 4, 9, 16, 32, 4)]
    for (B, Cin, T, F, MID, Cout) in cases:
        key, kx, kp = jax.random.split(key, 3)
        x = jax.random.normal(kx, (B, Cin, T, F), dtype=jnp.float32)  # NCHW
        params = make_params(kp, Cin, MID, Cout)

        out = jax.block_until_ready(tcn_blk(x, params))
        ref = jax.block_until_ready(tcn_blk_reference(x, params))

        assert out.shape == (B, Cout, T - 1, F), out.shape
        err = jnp.max(jnp.abs(out - ref))
        assert jnp.allclose(out, ref, atol=2e-4, rtol=2e-4), f"max abs err {err}"
    print("KERNEL_OK")
</pallas_src>

<mosaic_0001>
module attributes {stable_mosaic.version = 11 : i64} {
  func.func @tcn_blk_kernel(%arg0: i32, %arg1: memref<1x4x128xf32, #tpu.memory_space<vmem>>, %arg2: memref<32x4xf32, #tpu.memory_space<vmem>>, %arg3: memref<32x11xf32, #tpu.memory_space<vmem>>, %arg4: memref<4x128xf32, #tpu.memory_space<vmem>>, %arg5: memref<4x32xf32, #tpu.memory_space<vmem>>, %arg6: memref<4x2xf32, #tpu.memory_space<vmem>>, %arg7: memref<1x4x128xf32, #tpu.memory_space<vmem>>) attributes {dimension_semantics = [#tpu.dimension_semantics<parallel>], iteration_bounds = array<i64: 2>, scalar_prefetch = 0 : i64, scratch_operands = 0 : i64, tpu.core_type = #tpu.core_type<tc>, window_params = [{transform_indices = @transform_0, window_bounds = array<i64: 1, 4, 128>}, {pipeline_mode = #tpu.pipeline_mode<synchronous>, transform_indices = @transform_1, window_bounds = array<i64: 32, 4>}, {pipeline_mode = #tpu.pipeline_mode<synchronous>, transform_indices = @transform_2, window_bounds = array<i64: 32, 11>}, {pipeline_mode = #tpu.pipeline_mode<synchronous>, transform_indices = @transform_3, window_bounds = array<i64: 4, 128>}, {pipeline_mode = #tpu.pipeline_mode<synchronous>, transform_indices = @transform_4, window_bounds = array<i64: 4, 32>}, {pipeline_mode = #tpu.pipeline_mode<synchronous>, transform_indices = @transform_5, window_bounds = array<i64: 4, 2>}, {transform_indices = @transform_6, window_bounds = array<i64: 1, 4, 128>}]} {
    %c0 = arith.constant 0 : index
    %c0_0 = arith.constant 0 : index
    %c0_1 = arith.constant 0 : index
    %0 = vector.load %arg1[%c0, %c0_0, %c0_1] : memref<1x4x128xf32, #tpu.memory_space<vmem>>, vector<1x4x128xf32>
    %1 = vector.shape_cast %0 : vector<1x4x128xf32> to vector<4x128xf32>
    %c0_2 = arith.constant 0 : index
    %c0_3 = arith.constant 0 : index
    %2 = vector.load %arg3[%c0_2, %c0_3] : memref<32x11xf32, #tpu.memory_space<vmem>>, vector<32x11xf32>
    %3 = vector.extract_strided_slice %2 {offsets = [0, 0], sizes = [32, 1], strides = [1, 1]} : vector<32x11xf32> to vector<32x1xf32>
    %4 = vector.extract_strided_slice %2 {offsets = [0, 1], sizes = [32, 1], strides = [1, 1]} : vector<32x11xf32> to vector<32x1xf32>
    %5 = vector.extract_strided_slice %2 {offsets = [0, 2], sizes = [32, 1], strides = [1, 1]} : vector<32x11xf32> to vector<32x1xf32>
    %6 = vector.extract_strided_slice %2 {offsets = [0, 3], sizes = [32, 1], strides = [1, 1]} : vector<32x11xf32> to vector<32x1xf32>
    %7 = vector.extract_strided_slice %2 {offsets = [0, 4], sizes = [32, 1], strides = [1, 1]} : vector<32x11xf32> to vector<32x1xf32>
    %c0_4 = arith.constant 0 : index
    %c0_5 = arith.constant 0 : index
    %8 = vector.load %arg4[%c0_4, %c0_5] : memref<4x128xf32, #tpu.memory_space<vmem>>, vector<1x128xf32>
    %c1 = arith.constant 1 : index
    %c0_6 = arith.constant 0 : index
    %9 = vector.load %arg4[%c1, %c0_6] : memref<4x128xf32, #tpu.memory_space<vmem>>, vector<1x128xf32>
    %c2 = arith.constant 2 : index
    %c0_7 = arith.constant 0 : index
    %10 = vector.load %arg4[%c2, %c0_7] : memref<4x128xf32, #tpu.memory_space<vmem>>, vector<1x128xf32>
    %c3 = arith.constant 3 : index
    %c0_8 = arith.constant 0 : index
    %11 = vector.load %arg4[%c3, %c0_8] : memref<4x128xf32, #tpu.memory_space<vmem>>, vector<1x128xf32>
    %c0_9 = arith.constant 0 : index
    %c0_10 = arith.constant 0 : index
    %12 = vector.load %arg2[%c0_9, %c0_10] : memref<32x4xf32, #tpu.memory_space<vmem>>, vector<32x4xf32>
    %cst = arith.constant dense<0.000000e+00> : vector<32x128xf32>
    %13 = tpu.matmul %12, %1, %cst {dimension_numbers = #tpu.dot_dimension_numbers<[1], [0], [0], [1], [0, 0, 1, 1], [], []>} : vector<32x4xf32>, vector<4x128xf32>, vector<32x128xf32> -> vector<32x128xf32>
    %14 = vector.broadcast %3 : vector<32x1xf32> to vector<32x128xf32>
    %15 = arith.addf %13, %14 : vector<32x128xf32>
    %cst_11 = arith.constant 0.000000e+00 : f32
    %16 = vector.broadcast %cst_11 : f32 to vector<32x128xf32>
    %17 = arith.cmpf ogt, %15, %16 : vector<32x128xf32>
    %18 = vector.broadcast %7 : vector<32x1xf32> to vector<32x128xf32>
    %19 = arith.mulf %18, %15 : vector<32x128xf32>
    %20 = arith.select %17, %15, %19 : vector<32x128xi1>, vector<32x128xf32>
    %cst_12 = arith.constant 1.000000e+00 : f32
    %21 = vector.broadcast %cst_12 : f32 to vector<1x32xf32>
    %cst_13 = arith.constant dense<0.000000e+00> : vector<1x128xf32>
    %22 = tpu.matmul %21, %20, %cst_13 {dimension_numbers = #tpu.dot_dimension_numbers<[1], [0], [0], [1], [0, 0, 1, 1], [], []>} : vector<1x32xf32>, vector<32x128xf32>, vector<1x128xf32> -> vector<1x128xf32>
    %23 = arith.mulf %20, %20 : vector<32x128xf32>
    %cst_14 = arith.constant dense<0.000000e+00> : vector<1x128xf32>
    %24 = tpu.matmul %21, %23, %cst_14 {dimension_numbers = #tpu.dot_dimension_numbers<[1], [0], [0], [1], [0, 0, 1, 1], [], []>} : vector<1x32xf32>, vector<32x128xf32>, vector<1x128xf32> -> vector<1x128xf32>
    %25 = arith.mulf %22, %8 : vector<1x128xf32>
    %26 = vector.shape_cast %25 : vector<1x128xf32> to vector<1x1x128xf32>
    %cst_15 = arith.constant dense<0.000000e+00> : vector<1xf32>
    %27 = vector.multi_reduction <add>, %26, %cst_15 [1, 2] : vector<1x1x128xf32> to vector<1xf32>
    %28 = vector.shape_cast %27 : vector<1xf32> to vector<1x1x1xf32>
    %29 = vector.extract %28[0, 0, 0] : f32 from vector<1x1x1xf32>
    %cst_16 = arith.constant 4.096000e+03 : f32
    %30 = arith.divf %29, %cst_16 : f32
    %31 = arith.mulf %24, %8 : vector<1x128xf32>
    %32 = vector.shape_cast %31 : vector<1x128xf32> to vector<1x1x128xf32>
    %cst_17 = arith.constant dense<0.000000e+00> : vector<1xf32>
    %33 = vector.multi_reduction <add>, %32, %cst_17 [1, 2] : vector<1x1x128xf32> to vector<1xf32>
    %34 = vector.shape_cast %33 : vector<1xf32> to vector<1x1x1xf32>
    %35 = vector.extract %34[0, 0, 0] : f32 from vector<1x1x1xf32>
    %cst_18 = arith.constant 4.096000e+03 : f32
    %36 = arith.divf %35, %cst_18 : f32
    %37 = arith.mulf %30, %30 : f32
    %38 = arith.subf %36, %37 : f32
    %cst_19 = arith.constant 0.000000e+00 : f32
    %39 = arith.maximumf %38, %cst_19 : f32
    %cst_20 = arith.constant 9.99999974E-6 : f32
    %40 = arith.addf %39, %cst_20 : f32
    %41 = math.rsqrt %40 : f32
    %cst_21 = arith.constant 9.99999974E-6 : f32
    %42 = arith.addf %39, %cst_21 : f32
    %43 = arith.mulf %42, %41 : f32
    %44 = vector.broadcast %43 : f32 to vector<32x1xf32>
    %45 = arith.mulf %5, %44 : vector<32x1xf32>
    %46 = vector.broadcast %30 : f32 to vector<32x1xf32>
    %47 = arith.subf %45, %46 : vector<32x1xf32>
    %48 = vector.broadcast %47 : vector<32x1xf32> to vector<32x128xf32>
    %49 = arith.addf %20, %48 : vector<32x128xf32>
    %50 = vector.extract_strided_slice %2 {offsets = [0, 5], sizes = [32, 6], strides = [1, 1]} : vector<32x11xf32> to vector<32x6xf32>
    %51 = vector.broadcast %41 : f32 to vector<32x1xf32>
    %52 = arith.mulf %4, %51 : vector<32x1xf32>
    %53 = vector.broadcast %52 : vector<32x1xf32> to vector<32x6xf32>
    %54 = arith.mulf %50, %53 : vector<32x6xf32>
    %c1_i32 = arith.constant 1 : i32
    %55 = tpu.dynamic_rotate %49 by %c1_i32 dim 1 : vector<32x128xf32>, i32 -> vector<32x128xf32>
    %56 = vector.broadcast %9 : vector<1x128xf32> to vector<32x128xf32>
    %57 = arith.mulf %55, %56 : vector<32x128xf32>
    %58 = vector.extract_strided_slice %54 {offsets = [0, 0], sizes = [32, 1], strides = [1, 1]} : vector<32x6xf32> to vector<32x1xf32>
    %59 = vector.extract_strided_slice %54 {offsets = [0, 3], sizes = [32, 1], strides = [1, 1]} : vector<32x6xf32> to vector<32x1xf32>
    %60 = vector.broadcast %58 : vector<32x1xf32> to vector<32x128xf32>
    %61 = arith.mulf %60, %57 : vector<32x128xf32>
    %62 = vector.broadcast %59 : vector<32x1xf32> to vector<32x128xf32>
    %63 = arith.mulf %62, %57 : vector<32x128xf32>
    %64 = vector.extract_strided_slice %54 {offsets = [0, 1], sizes = [32, 1], strides = [1, 1]} : vector<32x6xf32> to vector<32x1xf32>
    %65 = vector.extract_strided_slice %54 {offsets = [0, 4], sizes = [32, 1], strides = [1, 1]} : vector<32x6xf32> to vector<32x1xf32>
    %66 = vector.broadcast %64 : vector<32x1xf32> to vector<32x128xf32>
    %67 = arith.mulf %66, %49 : vector<32x128xf32>
    %68 = arith.addf %61, %67 : vector<32x128xf32>
    %69 = vector.broadcast %65 : vector<32x1xf32> to vector<32x128xf32>
    %70 = arith.mulf %69, %49 : vector<32x128xf32>
    %71 = arith.addf %63, %70 : vector<32x128xf32>
    %c127_i32 = arith.constant 127 : i32
    %72 = tpu.dynamic_rotate %49 by %c127_i32 dim 1 : vector<32x128xf32>, i32 -> vector<32x128xf32>
    %73 = vector.broadcast %10 : vector<1x128xf32> to vector<32x128xf32>
    %74 = arith.mulf %72, %73 : vector<32x128xf32>
    %75 = vector.extract_strided_slice %54 {offsets = [0, 2], sizes = [32, 1], strides = [1, 1]} : vector<32x6xf32> to vector<32x1xf32>
    %76 = vector.extract_strided_slice %54 {offsets = [0, 5], sizes = [32, 1], strides = [1, 1]} : vector<32x6xf32> to vector<32x1xf32>
    %77 = vector.broadcast %75 : vector<32x1xf32> to vector<32x128xf32>
    %78 = arith.mulf %77, %74 : vector<32x128xf32>
    %79 = arith.addf %68, %78 : vector<32x128xf32>
    %80 = vector.broadcast %76 : vector<32x1xf32> to vector<32x128xf32>
    %81 = arith.mulf %80, %74 : vector<32x128xf32>
    %82 = arith.addf %71, %81 : vector<32x128xf32>
    %83 = vector.broadcast %6 : vector<32x1xf32> to vector<32x128xf32>
    %84 = arith.addf %79, %83 : vector<32x128xf32>
    %c112_i32 = arith.constant 112 : i32
    %85 = tpu.dynamic_rotate %82 by %c112_i32 dim 1 : vector<32x128xf32>, i32 -> vector<32x128xf32>
    %86 = arith.addf %84, %85 : vector<32x128xf32>
    %cst_22 = arith.constant dense<0.000000e+00> : vector<1x128xf32>
    %87 = tpu.matmul %21, %86, %cst_22 {dimension_numbers = #tpu.dot_dimension_numbers<[1], [0], [0], [1], [0, 0, 1, 1], [], []>} : vector<1x32xf32>, vector<32x128xf32>, vector<1x128xf32> -> vector<1x128xf32>
    %88 = arith.mulf %86, %86 : vector<32x128xf32>
    %cst_23 = arith.constant dense<0.000000e+00> : vector<1x128xf32>
    %89 = tpu.matmul %21, %88, %cst_23 {dimension_numbers = #tpu.dot_dimension_numbers<[1], [0], [0], [1], [0, 0, 1, 1], [], []>} : vector<1x32xf32>, vector<32x128xf32>, vector<1x128xf32> -> vector<1x128xf32>
    %90 = arith.mulf %87, %11 : vector<1x128xf32>
    %91 = vector.shape_cast %90 : vector<1x128xf32> to vector<1x1x128xf32>
    %cst_24 = arith.constant dense<0.000000e+00> : vector<1xf32>
    %92 = vector.multi_reduction <add>, %91, %cst_24 [1, 2] : vector<1x1x128xf32> to vector<1xf32>
    %93 = vector.shape_cast %92 : vector<1xf32> to vector<1x1x1xf32>
    %94 = vector.extract %93[0, 0, 0] : f32 from vector<1x1x1xf32>
    %cst_25 = arith.constant 3.584000e+03 : f32
    %95 = arith.divf %94, %cst_25 : f32
    %96 = arith.mulf %89, %11 : vector<1x128xf32>
    %97 = vector.shape_cast %96 : vector<1x128xf32> to vector<1x1x128xf32>
    %cst_26 = arith.constant dense<0.000000e+00> : vector<1xf32>
    %98 = vector.multi_reduction <add>, %97, %cst_26 [1, 2] : vector<1x1x128xf32> to vector<1xf32>
    %99 = vector.shape_cast %98 : vector<1xf32> to vector<1x1x1xf32>
    %100 = vector.extract %99[0, 0, 0] : f32 from vector<1x1x1xf32>
    %cst_27 = arith.constant 3.584000e+03 : f32
    %101 = arith.divf %100, %cst_27 : f32
    %102 = arith.mulf %95, %95 : f32
    %103 = arith.subf %101, %102 : f32
    %cst_28 = arith.constant 0.000000e+00 : f32
    %104 = arith.maximumf %103, %cst_28 : f32
    %cst_29 = arith.constant 9.99999974E-6 : f32
    %105 = arith.addf %104, %cst_29 : f32
    %106 = math.rsqrt %105 : f32
    %c0_30 = arith.constant 0 : index
    %c0_31 = arith.constant 0 : index
    %107 = vector.load %arg5[%c0_30, %c0_31] : memref<4x32xf32, #tpu.memory_space<vmem>>, vector<4x32xf32>
    %cst_32 = arith.constant dense<0.000000e+00> : vector<4x128xf32>
    %108 = tpu.matmul %107, %86, %cst_32 {dimension_numbers = #tpu.dot_dimension_numbers<[1], [0], [0], [1], [0, 0, 1, 1], [], []>} : vector<4x32xf32>, vector<32x128xf32>, vector<4x128xf32> -> vector<4x128xf32>
    %c0_33 = arith.constant 0 : index
    %c0_34 = arith.constant 0 : index
    %109 = vector.load %arg6[%c0_33, %c0_34] : memref<4x2xf32, #tpu.memory_space<vmem>>, vector<4x1xf32>
    %110 = arith.mulf %95, %106 : f32
    %c0_35 = arith.constant 0 : index
    %c1_36 = arith.constant 1 : index
    %111 = vector.load %arg6[%c0_35, %c1_36] : memref<4x2xf32, #tpu.memory_space<vmem>>, vector<4x1xf32>
    %112 = vector.broadcast %110 : f32 to vector<4x1xf32>
    %113 = arith.mulf %112, %111 : vector<4x1xf32>
    %114 = arith.subf %109, %113 : vector<4x1xf32>
    %115 = vector.broadcast %106 : f32 to vector<4x128xf32>
    %116 = arith.mulf %115, %108 : vector<4x128xf32>
    %117 = vector.broadcast %114 : vector<4x1xf32> to vector<4x128xf32>
    %118 = arith.addf %116, %117 : vector<4x128xf32>
    %c0_37 = arith.constant 0 : index
    %c0_38 = arith.constant 0 : index
    %c0_39 = arith.constant 0 : index
    %119 = vector.load %arg7[%c0_37, %c0_38, %c0_39] : memref<1x4x128xf32, #tpu.memory_space<vmem>>, vector<1x4x128xf32>
    %120 = vector.shape_cast %119 : vector<1x4x128xf32> to vector<4x128xf32>
    %121 = vector.shape_cast %118 : vector<4x128xf32> to vector<1x4x128xf32>
    tpu.vector_store %arg7[%c0_37, %c0_38, %c0_39], %121 {strides = array<i32>} : memref<1x4x128xf32, #tpu.memory_space<vmem>>, vector<1x4x128xf32>,
    return
  }
  func.func @transform_0(%arg0: i32) -> (i32, i32, i32) {
    %c0_i32 = arith.constant 0 : i32
    %c0_i32_0 = arith.constant 0 : i32
    %c0_i32_1 = arith.constant 0 : i32
    return %arg0, %c0_i32, %c0_i32_0 : i32, i32, i32
  }
  func.func @transform_1(%arg0: i32) -> (i32, i32) {
    %c0_i32 = arith.constant 0 : i32
    %c0_i32_0 = arith.constant 0 : i32
    %c0_i32_1 = arith.constant 0 : i32
    return %c0_i32, %c0_i32_0 : i32, i32
  }
  func.func @transform_2(%arg0: i32) -> (i32, i32) {
    %c0_i32 = arith.constant 0 : i32
    %c0_i32_0 = arith.constant 0 : i32
    %c0_i32_1 = arith.constant 0 : i32
    return %c0_i32, %c0_i32_0 : i32, i32
  }
  func.func @transform_3(%arg0: i32) -> (i32, i32) {
    %c0_i32 = arith.constant 0 : i32
    %c0_i32_0 = arith.constant 0 : i32
    %c0_i32_1 = arith.constant 0 : i32
    return %c0_i32, %c0_i32_0 : i32, i32
  }
  func.func @transform_4(%arg0: i32) -> (i32, i32) {
    %c0_i32 = arith.constant 0 : i32
    %c0_i32_0 = arith.constant 0 : i32
    %c0_i32_1 = arith.constant 0 : i32
    return %c0_i32, %c0_i32_0 : i32, i32
  }
  func.func @transform_5(%arg0: i32) -> (i32, i32) {
    %c0_i32 = arith.constant 0 : i32
    %c0_i32_0 = arith.constant 0 : i32
    %c0_i32_1 = arith.constant 0 : i32
    return %c0_i32, %c0_i32_0 : i32, i32
  }
  func.func @transform_6(%arg0: i32) -> (i32, i32, i32) {
    %c0_i32 = arith.constant 0 : i32
    %c0_i32_0 = arith.constant 0 : i32
    %c0_i32_1 = arith.constant 0 : i32
    return %arg0, %c0_i32, %c0_i32_0 : i32, i32, i32
  }
}

</mosaic_0001>

<bundles_post_ra>
// kernel: tpu_custom_call.1
= control target key start
LH: loop header
LB: loop body
LE: loop exit
PB: predicated region body
PF: predicated region fallthrough
CT: control target
= control target key end

     0   :  { %11 = vsyncpa [#allocation3], 0  ;;  %s1437_s0 = inlined_call_operand.vmem [shape: f32[2,4,128], index: 0, kind: input, shape index: {}]   ;;  %s1438_s1 = inlined_call_operand.vmem [shape: f32[32,4], index: 1, kind: input, shape index: {}]   ;;  %s1439_s2 = inlined_call_operand.vmem [shape: f32[32,11], index: 2, kind: input, shape index: {}]   ;;  %s1440_s3 = inlined_call_operand.vmem [shape: f32[4,128], index: 3, kind: input, shape index: {}]   ;;  %s1441_s4 = inlined_call_operand.vmem [shape: f32[4,32], index: 4, kind: input, shape index: {}]   ;;  %s1442_s5 = inlined_call_operand.vmem [shape: f32[4,2], index: 5, kind: input, shape index: {}]   ;;  %s1443_s6 = inlined_call_operand.hbm [shape: f32[2,4,128], index: 6, kind: output, shape index: {}]  }
   0x1   :  { %13 = vsyncpa [#allocation3 + $0x1], 0  ;;  %s1190_s21 = smov 0   ;;  %s1192_s22 = smov 0  }
   0x2   :  { %s1194_s23 = smov 0   ;;  %s1196_s24 = smov 0  }
   0x3 LB: > { %s1211_s25 = sadd.s32 4294967295, %s1135_s24   ;;  %s938_s26 = sadd.s32 4294967294, %s1135_s24   ;;  %s1135_s24 = sphi %s1196_s24, %s1449_s24   ;;  %s1131_s23 = sphi %s1194_s23, %s1448_s23   ;;  %s1127_s22 = sphi %s1192_s22, %s1447_s22   ;;  %s1123_s21 = sphi %s1190_s21, %s1446_s21  }
   0x4   : > { %s1215_s27 = sadd.s32 1, %s1135_s24   ;;  %s157_s28 = sadd.s32 1, %s1131_s23 }
   0x5   : > { %s154_s29 = ssub.s32 %s1135_s24, %s1215_s27  ;;  %p167_p0 = scmp.ne.s32.totalorder %s1131_s23, %s1127_s22 }
   0x6   : > { %p155_p1 = scmp.eq.s32.totalorder %s154_s29, 0  ;;  %p168_p2 = scmp.eq.s32.totalorder %s1211_s25, 1 }
   0x7   : > { %p173_p3 = scmp.ne.s32.totalorder %s1127_s22, %s1123_s21  ;;  %p174_p4 = scmp.eq.s32.totalorder %s938_s26, 1 }
   0x8   : > { %s1226_s30 = scalar_select %p155_p1, %s1131_s23, %s157_s28  }
   0x9   : > { %p1228_p5 = por %p168_p2, %p167_p0  ;;  %p1232_p6 = por %p174_p4, %p173_p3 }
   0xa   : > { %p941_p7 = scmp.ge.s32.totalorder %s1135_s24, 1  ;;  %p214_p8 = scmp.lt.s32.totalorder %s1135_s24, 3 }
   0xc   : > { %p215_p9 = pnand %p941_p7, %p214_p8 }
   0xd   : > { %p243_p10 = scmp.lt.s32.totalorder (!%p215_p9), %s1211_s25, 1  ;;  %s1141_s9 = smov (!%p215_p9), 0.0  }
   0xe   : > { %218 = sbr.rel (%p215_p9) target bundleno = 1633 (0x661), region = 44  ;;  %s1150_s15 = smov (!%p215_p9), 1  }
  0x13   : > { %v1241_v0 = vld [vmem:[%s1439_s2 + $0x18] sm:$0xff]  ;;  %v1137_v1 = vmov 4   ;;  %s244_s11 = scalar_select %p243_p10, %s1211_s25, 1  ;;  %v1138_v2 = vmov 0   ;;  %v1250_v3 = vld [vmem:[%s1439_s2 + $0x10] sm:$0xff]  ;;  %vm293_vm0 = vcmask 1043456  }
  0x14   : > { %1033 = vset.pattern.permute.xlu1 %v1137_v1  ;;  %1035 = vset.pattern.permute.xlu2 %v1137_v1  ;;  %v256_v4 = vld [vmem:[%s1438_s1] sm:$0xff]  ;;  %vm280_vm1 = vcmask 31744   ;;  %v259_v5 = vld [vmem:[%s1438_s1 + $0x18] sm:$0xff]  ;;  %v1268_v7 = vld [vmem:[%s1439_s2 + $0x8] sm:$0xff]  ;;  %vm354_vm6 = vcmask 261120   ;;  %v1139_v39 = vmov 1.0  }
  0x15   : > { %343 = vperm.xlu1 %1033, %v1241_v0   ;;  %1032 = vset.pattern.permute.xlu0 %v1138_v2  ;;  %s943_s14 = sshll.u32 %s244_s11, 2  ;;  %v1276_v8 = vld [vmem:[%s1439_s2] sm:$0xff]  ;;  %v257_v9 = vld [vmem:[%s1438_s1 + $0x8] sm:$0xff]  ;;  %v258_v10 = vld [vmem:[%s1438_s1 + $0x10] sm:$0xff]  ;;  %vm403_vm7 = vcmask 1040384   ;;  %v1140_v47 = vmov 4096.0  }
  0x16   : > { %277 = vperm.xlu0 %1032, %v1241_v0   ;;  %339 = vperm.xlu2 %1035, %v1250_v3   ;;  %s246_s17 = scalar_lea.vmem %s1437_s0, %s943_s14  ;;  %v252_v40 = vld [vmem:[%s1440_s3] sm:$0x1]  ;;  %1065 = vrcp.f32 %v1140_v47  ;;  %s1149_s14 = smov 127  }
  0x17   : > { %v247_v6 = vld [vmem:[%s246_s17] sm:$0xf] }
  0x18   : > { %944 = vmatpush.msk.msra.mxu0 %vm293_vm0, %v247_v6  ;;  %958 = vmatpush.msk.msra.mxu3 %vm293_vm0, %v247_v6 }
  0x19   : > { %945 = vmatmul.msk.f32.vlgmr.msra.gmra.mxu0 %vm280_vm1, %v256_v4  ;;  %948 = vmatmul.msk.f32.vlgmr.msra.gmra.mxu3 %vm280_vm1, %v259_v5 }
  0x1c   : > { %v1066_v48 = vpop.eup %1065 }
  0x1d   : > { %1034 = vset.pattern.permute.xlu1 %v1138_v2  ;;  %v415_v49 = vmul.f32 4096.0, %v1066_v48  ;;  %vm419_vm8 = vweird.f32 %v1066_v48 }
  0x1e   : > { %267 = vperm.xlu1 %1034, %v1268_v7   ;;  %272 = vperm.xlu0 %1032, %v1250_v3  }
  0x1f   : > { %1036 = vset.pattern.permute.xlu2 %v1138_v2  ;;  %v416_v50 = vsub.f32 1.0, %v415_v49  ;;  %v1146_v49 = vmov 10  }
  0x20   : > { %262 = vperm.xlu2 %1036, %v1276_v8  }
  0x21   : > { %946 = vmatmul.msk.f32.gmra.mxu0 %vm280_vm1, %v257_v9  ;;  %v417_v54 = vmul.f32 %v1066_v48, %v416_v50  ;;  %v1147_v50 = vmov 5  }
  0x23   : > { %v418_v57 = vadd.f32 %v1066_v48, %v417_v54 }
  0x25   : > { %v420_v63 = vsel %vm419_vm8, %v1066_v48, %v418_v57 }
  0x26   : > { %1038 = vset.pattern.permute.xlu1 %v1137_v1  ;;  %1037 = vset.pattern.permute.xlu0 %v1137_v1 }
  0x27   : > { %331 = vperm.xlu1 %1038, %v1276_v8   ;;  %335 = vperm.xlu0 %1037, %v1268_v7  }
  0x29   : > { %947 = vmatmul.msk.f32.gmra.mxu0 %vm280_vm1, %v258_v10 }
  0x70   : > { %v340_v14 = vpop.permute.xlu2 %339 }
  0x7a   : > { %v263_v22 = vpop.permute.xlu2 %262 }
  0x87   : > { %v344_v12 = vpop.permute.xlu1 %343 }
  0x88   : > { %v278_v11 = vpop.permute.xlu0 %277 }
  0x90   : > { %v273_v15 = vpop.permute.xlu0 %272  ;;  %v268_v16 = vpop.permute.xlu1 %267 }
  0x96   : > { %v314_v13 = vpop.f32.mrf.mxu0 }
  0x97   : > { %v315_v26 = vadd.f32 %v314_v13, %v263_v22 }
  0x99   : > { %v336_v25 = vpop.permute.xlu0 %335  ;;  %v332_v27 = vpop.permute.xlu1 %331  ;;  %vm326_vm5 = vcmp.gt.f32.partialorder %v315_v26, 0.0 }
  0x9a   : > { %v346_v31 = vmul.f32 %v332_v27, %v315_v26 }
  0x9c   : > { %v323_v17 = vpop.f32.mrf.mxu3  ;;  %v1302_v36 = vsel %vm326_vm5, %v315_v26, %v346_v31 }
  0x9d   : > { %v324_v18 = vadd.f32 %v323_v17, %v278_v11  ;;  %v378_v38 = vmul.f32 %v1302_v36, %v1302_v36  ;;  %v1142_v17 = vmov 1  }
  0x9e   : > { %v317_v19 = vpop.f32.mrf.mxu0  ;;  %1039 = vset.pattern.permute.xlu0 %v1142_v17  ;;  %1040 = vset.pattern.permute.xlu1 %v1142_v17 }
  0x9f   : > { %v349_v20 = vmul.f32 %v344_v12, %v324_v18  ;;  %vm329_vm2 = vcmp.gt.f32.partialorder %v324_v18, 0.0  ;;  %v318_v24 = vadd.f32 %v317_v19, %v268_v16  ;;  %1041 = vset.pattern.permute.xlu2 %v1142_v17 }
  0xa1   : > { %v1290_v21 = vsel %vm329_vm2, %v324_v18, %v349_v20  ;;  %v347_v29 = vmul.f32 %v336_v25, %v318_v24  ;;  %vm327_vm3 = vcmp.gt.f32.partialorder %v318_v24, 0.0 }
  0xa2   : > { %370 = vmatpush.msra.mxu1 %v1290_v21  ;;  %v381_v23 = vmul.f32 %v1290_v21, %v1290_v21 }
  0xa3   : > { %v1297_v34 = vsel %vm327_vm3, %v318_v24, %v347_v29 }
  0xa4   : > { %394 = vmatpush.msra.mxu2 %v381_v23  ;;  %v379_v37 = vmul.f32 %v1297_v34, %v1297_v34 }
  0xa6   : > { %v320_v28 = vpop.f32.mrf.mxu0 }
  0xa7   : > { %v321_v30 = vadd.f32 %v320_v28, %v273_v15  ;;  %v1143_v28 = vmov 2  }
  0xa9   : > { %v348_v32 = vmul.f32 %v340_v14, %v321_v30  ;;  %vm328_vm4 = vcmp.gt.f32.partialorder %v321_v30, 0.0 }
  0xab   : > { %v1295_v33 = vsel %vm328_vm4, %v321_v30, %v348_v32 }
  0xac   : > { %371 = vmatpush.msra.mxu1 %v1295_v33  ;;  %v380_v35 = vmul.f32 %v1295_v33, %v1295_v33 }
  0xae   : > { %372 = vmatpush.msra.mxu1 %v1297_v34  ;;  %395 = vmatpush.msra.mxu2 %v380_v35 }
  0xb0   : > { %373 = vmatpush.msra.mxu1 %v1302_v36  ;;  %396 = vmatpush.msra.mxu2 %v379_v37 }
  0xb1   : > { %949 = vmatmul.msk.f32.vlgmr.msra.gmra.mxu1 %vm354_vm6, %v1139_v39 }
  0xb2   : > { %397 = vmatpush.msra.mxu2 %v378_v38  ;;  %v1144_v38 = vmov 9  }
  0xb3   : > { %950 = vmatmul.msk.f32.vlgmr.msra.gmra.mxu2 %vm354_vm6, %v1139_v39 }
 0x12e   : > { %v375_v41 = vpop.f32.mrf.mxu1 }
 0x12f   : > { %v402_v42 = vmul.f32 %v375_v41, %v252_v40 }
 0x131   : > { %v404_v43 = vsel %vm403_vm7, %v402_v42, 0.0 }
 0x132   : > { %405 = vadd.xlane.f32.xlu2 %v404_v43 }
 0x136   : > { %v399_v44 = vpop.f32.mrf.mxu2 }
 0x137   : > { %v423_v45 = vmul.f32 %v399_v44, %v252_v40  ;;  %v1145_v40 = vmov 8  }
 0x139   : > { %v424_v46 = vsel %vm403_vm7, %v423_v45, 0.0 }
 0x13a   : > { %425 = vadd.xlane.f32.xlu1 %v424_v46 }
 0x1a5   : > { %v406_v51 = vpop.xlane.xlu2 %405 }
 0x1a6   : > { %v407_v52 = vrot.slane %v406_v51, 4 }
 0x1a8   : > { %v408_v53 = vadd.f32 %v407_v52, %v406_v51  ;;  %v1148_v51 = vmov 6  }
 0x1aa   : > { %v409_v55 = vrot.slane %v408_v53, 2 }
 0x1ac   : > { %v410_v56 = vadd.f32 %v409_v55, %v408_v53 }
 0x1ad   : > { %v426_v58 = vpop.xlane.xlu1 %425 }
 0x1ae   : > { %v427_v59 = vrot.slane %v426_v58, 4  ;;  %v411_v60 = vrot.slane %v410_v56, 1 }
 0x1b0   : > { %v428_v61 = vadd.f32 %v427_v59, %v426_v58  ;;  %v412_v62 = vadd.f32 %v411_v60, %v410_v56 }
 0x1b2   : > { %v429_v1 = vrot.slane %v428_v61, 2  ;;  %959 = vpush %v412_v62 }
 0x1b3   : > { %961 = vpush %v420_v63 }
 0x1b4   : > { %v430_v4 = vadd.f32 %v429_v1, %v428_v61 }
 0x1b6   : > { %v431_v5 = vrot.slane %v430_v4, 1 }
 0x1b8   : > { %v432_v6 = vadd.f32 %v431_v5, %v430_v4 }
 0x1ba   : > { %963 = vpush %v432_v6 }
 0x1e3   : > { %s960_s17 = spop %959 }
 0x1e4   : > { %s962_s18 = spop %961 }
 0x1e5   : > { %s1319_s19 = smul.f32 %s962_s18, %s960_s17 }
 0x1e7   : > { %s443_s20 = smul.f32 %s1319_s19, %s1319_s19  ;;  %v465_v26 = vstv %s1319_s19 }
 0x1eb   : > { %s964_s26 = spop %963 }
 0x1ec   : > { %s442_s28 = smul.f32 %s964_s26, %s962_s18 }
 0x1ee   : > { %s444_s29 = ssub.f32 %s442_s28, %s443_s20  ;;  %s1153_s20 = smov 112  }
 0x1f0   : > { %s445_s10 = smax.f32 %s1141_s9, %s444_s29  ;;  %s1093_s29 = scalar_lea.hbm %s1443_s6, 8 }
 0x1f1   : > { %s446_s11 = sadd.f32 1e-05, %s445_s10  ;;  %s240_s10 = sand.u32 1, %s1127_s22  }
 0x1f3   : > { %v447_v9 = vstv %s446_s11 }
 0x1f4   : > { %1067 = vrsqrt.f32 %v447_v9  ;;  %vm454_vm10 = vweird.f32 %v447_v9 }
 0x1fa   : > { %v1068_v10 = vpop.eup %1067 }
 0x1fb   : > { %v449_v11 = vmul.f32 %v1068_v10, %v447_v9  ;;  %vm455_vm9 = vweird.f32 %v1068_v10  ;;  %v1063_v9 = vld [vmem:[%s1440_s3 + $0x1] ss:$0 sm:$0xff] }
 0x1fc   : > { %vm456_vm11 = vmor %vm454_vm10, %vm455_vm9 }
 0x1fd   : > { %v450_v12 = vmul.f32 %v1068_v10, %v449_v11 }
 0x1ff   : > { %v451_v13 = vmul.f32 0.5, %v450_v12 }
 0x201   : > { %v452_v14 = vsub.f32 1.5, %v451_v13 }
 0x203   : > { %v453_v15 = vmul.f32 %v1068_v10, %v452_v14 }
 0x205   : > { %v457_v16 = vsel %vm456_vm11, %v1068_v10, %v453_v15 }
 0x206   : > { %965 = vpush %v457_v16  ;;  %v1064_v16 = vld [vmem:[%s1440_s3 + $0x2] ss:$0 sm:$0xff] }
 0x237   : > { %s966_s12 = spop %965 }
 0x238   : > { %s459_s13 = smul.f32 %s966_s12, %s446_s11  ;;  %v494_v18 = vstv %s966_s12 }
 0x239   : > { %v498_v19 = vmul.f32 %v494_v18, %v1241_v0  ;;  %v497_v20 = vmul.f32 %v494_v18, %v1250_v3  ;;  %v496_v22 = vmul.f32 %v494_v18, %v1268_v7  ;;  %v495_v25 = vmul.f32 %v494_v18, %v1276_v8 }
 0x23a   : > { %v460_v23 = vstv %s459_s13 }
 0x23b   : > { %516 = vperm.xlu0 %1039, %v498_v19   ;;  %511 = vperm.xlu1 %1040, %v497_v20   ;;  %v462_v24 = vmul.f32 %v460_v23, %v1268_v7  ;;  %v464_v29 = vmul.f32 %v460_v23, %v1241_v0  ;;  %v463_v31 = vmul.f32 %v460_v23, %v1250_v3 }
 0x23c   : > { %506 = vperm.xlu2 %1041, %v496_v22   ;;  %v461_v35 = vmul.f32 %v460_v23, %v1276_v8 }
 0x23d   : > { %v467_v27 = vsub.f32 %v462_v24, %v465_v26  ;;  %v469_v30 = vsub.f32 %v464_v29, %v465_v26  ;;  %v468_v32 = vsub.f32 %v463_v31, %v465_v26 }
 0x23e   : > { %v466_v37 = vsub.f32 %v461_v35, %v465_v26 }
 0x243   : > { %501 = vperm.xlu0 %1039, %v495_v25   ;;  %1045 = vset.pattern.permute.xlu1 %v1144_v38 }
 0x244   : > { %1043 = vset.pattern.permute.xlu2 %v1143_v28 }
 0x245   : > { %477 = vperm.xlu2 %1043, %v467_v27  }
 0x24b   : > { %1042 = vset.pattern.permute.xlu0 %v1143_v28 }
 0x24c   : > { %487 = vperm.xlu0 %1042, %v469_v30  }
 0x24d   : > { %1044 = vset.pattern.permute.xlu2 %v1145_v40 }
 0x254   : > { %482 = vperm.xlu0 %1042, %v468_v32  }
 0x25c   : > { %472 = vperm.xlu0 %1042, %v466_v37  }
 0x264   : > { %1047 = vset.pattern.permute.xlu0 %v1144_v38 }
 0x296   : > { %v507_v45 = vpop.permute.xlu2 %506 }
 0x297   : > { %v520_v48 = vmul.f32 %v507_v45, %v1268_v7 }
 0x29f   : > { %v478_v54 = vpop.permute.xlu2 %477 }
 0x2a0   : > { %v1344_v55 = vadd.f32 %v478_v54, %v1297_v34  ;;  %v1151_v34 = vmov 3  }
 0x2ad   : > { %v517_v41 = vpop.permute.xlu0 %516  ;;  %v512_v42 = vpop.permute.xlu1 %511 }
 0x2ae   : > { %v522_v43 = vmul.f32 %v517_v41, %v1241_v0  ;;  %v521_v44 = vmul.f32 %v512_v42, %v1250_v3 }
 0x2b0   : > { %617 = vperm.xlu1 %1045, %v522_v43   ;;  %573 = vperm.xlu2 %1044, %v522_v43  }
 0x2b1   : > { %613 = vperm.xlu0 %1047, %v521_v44  }
 0x2b5   : > { %v502_v46 = vpop.permute.xlu0 %501 }
 0x2b6   : > { %v519_v47 = vmul.f32 %v502_v46, %v1276_v8 }
 0x2b8   : > { %1046 = vset.pattern.permute.xlu1 %v1145_v40  ;;  %1052 = vset.pattern.permute.xlu2 %v1144_v38 }
 0x2b9   : > { %609 = vperm.xlu0 %1047, %v520_v48   ;;  %569 = vperm.xlu1 %1046, %v521_v44  }
 0x2ba   : > { %605 = vperm.xlu2 %1052, %v519_v47  }
 0x2be   : > { %v488_v52 = vpop.permute.xlu0 %487 }
 0x2bf   : > { %v1338_v53 = vadd.f32 %v488_v52, %v1290_v21 }
 0x2c1   : > { %1051 = vset.pattern.permute.xlu0 %v1145_v40  ;;  %1048 = vset.pattern.permute.xlu1 %v1146_v49 }
 0x2c2   : > { %1053 = vset.pattern.permute.xlu2 %v1146_v49  ;;  %561 = vperm.xlu0 %1051, %v519_v47  }
 0x2c3   : > { %678 = vperm.xlu1 %1048, %v522_v43   ;;  %670 = vperm.xlu2 %1053, %v520_v48  }
 0x2c6   : > { %v483_v56 = vpop.permute.xlu0 %482 }
 0x2c7   : > { %v1348_v21 = vadd.f32 %v483_v56, %v1295_v33  ;;  %v1152_v33 = vmov 7  }
 0x2ca   : > { %1054 = vset.pattern.permute.xlu0 %v1147_v50 }
 0x2cb   : > { %1049 = vset.pattern.permute.xlu1 %v1145_v40  ;;  %1055 = vset.pattern.permute.xlu2 %v1148_v51 }
 0x2cc   : > { %553 = vperm.xlu0 %1054, %v522_v43   ;;  %565 = vperm.xlu1 %1049, %v520_v48  }
 0x2cd   : > { %593 = vperm.xlu2 %1055, %v522_v43  }
 0x2ce   : > { %v473_v57 = vpop.permute.xlu0 %472 }
 0x2cf   : > { %v1353_v58 = vadd.f32 %v473_v57, %v1302_v36 }
 0x2d4   : > { %634 = vrot.lane.b32.xlu0 %v1338_v53, %s1149_s14  ;;  %1050 = vset.pattern.permute.xlu1 %v1146_v49 }
 0x2d5   : > { %529 = vrot.lane.b32.xlu2 %v1338_v53, %s1150_s15  ;;  %674 = vperm.xlu1 %1050, %v521_v44  }
 0x2dc   : > { %543 = vperm.xlu0 %1054, %v520_v48  }
 0x2dd   : > { %525 = vrot.lane.b32.xlu2 %v1344_v55, %s1150_s15  ;;  %666 = vperm.xlu1 %1050, %v519_v47  }
 0x2e4   : > { %538 = vperm.xlu0 %1054, %v519_v47  }
 0x2e5   : > { %632 = vrot.lane.b32.xlu2 %v1348_v21, %s1149_s14  ;;  %1056 = vset.pattern.permute.xlu1 %v1147_v50 }
 0x2e6   : > { %548 = vperm.xlu1 %1056, %v521_v44  }
 0x2ec   : > { %1058 = vset.pattern.permute.xlu0 %v1151_v34 }
 0x2ed   : > { %523 = vrot.lane.b32.xlu2 %v1353_v58, %s1150_s15  ;;  %702 = vperm.xlu0 %1058, %v1241_v0  }
 0x2ee   : > { %527 = vrot.lane.b32.xlu1 %v1348_v21, %s1150_s15 }
 0x2ef   : > { %1057 = vset.pattern.permute.xlu1 %v1152_v33 }
 0x2f5   : > { %630 = vrot.lane.b32.xlu2 %v1344_v55, %s1149_s14  ;;  %1062 = vset.pattern.permute.xlu0 %v1138_v2 }
 0x2f6   : > { %628 = vrot.lane.b32.xlu1 %v1353_v58, %s1149_s14 }
 0x2fd   : > { %589 = vperm.xlu2 %1055, %v521_v44  }
 0x2fe   : > { %654 = vperm.xlu1 %1057, %v522_v43  }
 0x305   : > { %585 = vperm.xlu2 %1055, %v520_v48  }
 0x306   : > { %650 = vperm.xlu1 %1057, %v521_v44  }
 0x30a   : > { %v574_v36 = vpop.permute.xlu2 %573 }
 0x30d   : > { %581 = vperm.xlu2 %1055, %v519_v47  }
 0x30e   : > { %646 = vperm.xlu1 %1057, %v520_v48  }
 0x314   : > { %v1363_v0 = vpop.permute.xlu2 %605 }
 0x315   : > { %1059 = vset.pattern.permute.xlu2 %v1152_v33 }
 0x316   : > { %642 = vperm.xlu2 %1059, %v519_v47   ;;  %1060 = vset.pattern.permute.xlu1 %v1151_v34 }
 0x317   : > { %698 = vperm.xlu1 %1060, %v1250_v3  }
 0x31d   : > { %v671_v59 = vpop.permute.xlu2 %670 }
 0x31e   : > { %1061 = vset.pattern.permute.xlu2 %v1151_v34 }
 0x31f   : > { %694 = vperm.xlu1 %1060, %v1268_v7  }
 0x322   : > { %v618_v2 = vpop.permute.xlu1 %617 }
 0x323   : > { %v614_v60 = vpop.permute.xlu0 %613  ;;  %v623_v18 = vmul.f32 %v618_v2, %v1338_v53 }
 0x324   : > { %v622_v47 = vmul.f32 %v614_v60, %v1348_v21 }
 0x327   : > { %v594_v61 = vpop.permute.xlu2 %593 }
 0x328   : > { %v599_v12 = vmul.f32 %v594_v61, %v1338_v53 }
 0x32b   : > { %v610_v62 = vpop.permute.xlu0 %609  ;;  %v570_v63 = vpop.permute.xlu1 %569 }
 0x32c   : > { %v621_v32 = vmul.f32 %v610_v62, %v1344_v55 }
 0x32f   : > { %v530_v1 = vpop.permute.xlu2 %529 }
 0x330   : > { %v535_v10 = vmul.f32 %v1063_v9, %v530_v1 }
 0x332   : > { %v579_v15 = vmul.f32 %v574_v36, %v535_v10 }
 0x334   : > { %v562_v4 = vpop.permute.xlu0 %561  ;;  %v627_v23 = vadd.f32 %v623_v18, %v579_v15 }
 0x335   : > { %v679_v5 = vpop.permute.xlu1 %678 }
 0x337   : > { %v526_v6 = vpop.permute.xlu2 %525 }
 0x338   : > { %v533_v26 = vmul.f32 %v1063_v9, %v526_v6 }
 0x33e   : > { %v554_v11 = vpop.permute.xlu0 %553  ;;  %v566_v3 = vpop.permute.xlu1 %565 }
 0x33f   : > { %v559_v13 = vmul.f32 %v554_v11, %v535_v10  ;;  %v633_v7 = vpop.permute.xlu2 %632  ;;  %v577_v27 = vmul.f32 %v566_v3, %v533_v26 }
 0x340   : > { %v639_v49 = vmul.f32 %v1064_v16, %v633_v7 }
 0x341   : > { %v603_v14 = vadd.f32 %v599_v12, %v559_v13  ;;  %v625_v37 = vadd.f32 %v621_v32, %v577_v27 }
 0x346   : > { %v635_v17 = vpop.permute.xlu0 %634 }
 0x347   : > { %v640_v19 = vmul.f32 %v1064_v16, %v635_v17  ;;  %v524_v20 = vpop.permute.xlu2 %523  ;;  %v675_v22 = vpop.permute.xlu1 %674 }
 0x348   : > { %v532_v53 = vmul.f32 %v1063_v9, %v524_v20  ;;  %v683_v54 = vmul.f32 %v675_v22, %v639_v49 }
 0x349   : > { %v684_v24 = vmul.f32 %v679_v5, %v640_v19 }
 0x34a   : > { %v576_v2 = vmul.f32 %v562_v4, %v532_v53 }
 0x34b   : > { %v688_v25 = vadd.f32 %v684_v24, %v627_v23 }
 0x34d   : > { %715 = vrot.lane.b32.xlu2 %v688_v25, %s1153_s20 }
 0x34e   : > { %v544_v28 = vpop.permute.xlu0 %543 }
 0x34f   : > { %v557_v29 = vmul.f32 %v544_v28, %v533_v26  ;;  %v631_v30 = vpop.permute.xlu2 %630  ;;  %v667_v31 = vpop.permute.xlu1 %666 }
 0x350   : > { %v638_v35 = vmul.f32 %v1064_v16, %v631_v30 }
 0x352   : > { %v682_v38 = vmul.f32 %v671_v59, %v638_v35 }
 0x354   : > { %v686_v40 = vadd.f32 %v682_v38, %v625_v37  ;;  %v255_v38 = vld [vmem:[%s1440_s3 + $0x3] sm:$0x1] }
 0x355   : > { %690 = vperm.xlu2 %1061, %v1276_v8  }
 0x356   : > { %711 = vrot.lane.b32.xlu1 %v686_v40, %s1153_s20  ;;  %v539_v8 = vpop.permute.xlu0 %538 }
 0x357   : > { %v590_v41 = vpop.permute.xlu2 %589  ;;  %v556_v36 = vmul.f32 %v539_v8, %v532_v53 }
 0x358   : > { %v549_v42 = vpop.permute.xlu1 %548  ;;  %v598_v50 = vmul.f32 %v590_v41, %v1348_v21  ;;  %v620_v21 = vmul.f32 %v1363_v0, %v1353_v58 }
 0x35f   : > { %v586_v43 = vpop.permute.xlu2 %585  ;;  %v703_v17 = vpop.permute.xlu0 %702 }
 0x360   : > { %v597_v44 = vmul.f32 %v586_v43, %v1344_v55  ;;  %v528_v45 = vpop.permute.xlu1 %527 }
 0x361   : > { %v534_v46 = vmul.f32 %v1063_v9, %v528_v45 }
 0x362   : > { %v601_v48 = vadd.f32 %v597_v44, %v557_v29 }
 0x363   : > { %v558_v51 = vmul.f32 %v549_v42, %v534_v46  ;;  %v578_v52 = vmul.f32 %v570_v63, %v534_v46  ;;  %v624_v63 = vadd.f32 %v620_v21, %v576_v2  ;;  %v821_v46 = vld [vmem:[%s1441_s4] sm:$0xf] }
 0x365   : > { %v626_v56 = vadd.f32 %v622_v47, %v578_v52  ;;  %v602_v57 = vadd.f32 %v598_v50, %v558_v51 }
 0x367   : > { %v582_v34 = vpop.permute.xlu2 %581  ;;  %v687_v33 = vadd.f32 %v683_v54, %v626_v56 }
 0x368   : > { %v596_v55 = vmul.f32 %v582_v34, %v1353_v58  ;;  %v629_v59 = vpop.permute.xlu1 %628 }
 0x369   : > { %v637_v61 = vmul.f32 %v1064_v16, %v629_v59  ;;  %713 = vrot.lane.b32.xlu0 %v687_v33, %s1153_s20 }
 0x36a   : > { %v600_v60 = vadd.f32 %v596_v55, %v556_v36 }
 0x36b   : > { %v681_v62 = vmul.f32 %v667_v31, %v637_v61 }
 0x36d   : > { %v685_v1 = vadd.f32 %v681_v62, %v624_v63 }
 0x370   : > { %v643_v5 = vpop.permute.xlu2 %642  ;;  %v655_v6 = vpop.permute.xlu1 %654 }
 0x371   : > { %v657_v9 = vmul.f32 %v643_v5, %v637_v61  ;;  %v660_v10 = vmul.f32 %v655_v6, %v640_v19  ;;  %709 = vrot.lane.b32.xlu0 %v685_v1, %s1153_s20 }
 0x373   : > { %v664_v11 = vadd.f32 %v660_v10, %v603_v14  ;;  %v661_v3 = vadd.f32 %v657_v9, %v600_v60 }
 0x375   : > { %v708_v18 = vadd.f32 %v703_v17, %v664_v11 }
 0x378   : > { %v651_v12 = vpop.permute.xlu1 %650 }
 0x379   : > { %v659_v4 = vmul.f32 %v651_v12, %v639_v49 }
 0x37b   : > { %v663_v13 = vadd.f32 %v659_v4, %v602_v57 }
 0x380   : > { %v647_v7 = vpop.permute.xlu1 %646 }
 0x381   : > { %v658_v15 = vmul.f32 %v647_v7, %v638_v35 }
 0x383   : > { %v662_v16 = vadd.f32 %v658_v15, %v601_v48 }
 0x389   : > { %v699_v22 = vpop.permute.xlu1 %698 }
 0x38a   : > { %v707_v24 = vadd.f32 %v699_v22, %v663_v13 }
 0x391   : > { %v695_v19 = vpop.permute.xlu1 %694 }
 0x392   : > { %v706_v14 = vadd.f32 %v695_v19, %v662_v16 }
 0x3a7   : > { %v716_v58 = vpop.permute.xlu2 %715 }
 0x3a8   : > { %v720_v0 = vadd.f32 %v716_v58, %v708_v18 }
 0x3aa   : > { %733 = vmatpush.msrb.mxu3 %v720_v0  ;;  %837 = vmatpush.msrb.mxu2 %v720_v0  ;;  %v744_v20 = vmul.f32 %v720_v0, %v720_v0 }
 0x3ac   : > { %757 = vmatpush.msrb.mxu1 %v744_v20 }
 0x3af   : > { %v691_v29 = vpop.permute.xlu2 %690 }
 0x3b0   : > { %v705_v31 = vadd.f32 %v691_v29, %v661_v3  ;;  %v845_v3 = vld [vmem:[%s1442_s5] sm:$0xf] }
 0x3c8   : > { %v712_v23 = vpop.permute.xlu1 %711 }
 0x3c9   : > { %v718_v26 = vadd.f32 %v712_v23, %v706_v14 }
 0x3cb   : > { %v742_v30 = vmul.f32 %v718_v26, %v718_v26 }
 0x3db   : > { %v714_v25 = vpop.permute.xlu0 %713 }
 0x3dc   : > { %v719_v27 = vadd.f32 %v714_v25, %v707_v24 }
 0x3de   : > { %734 = vmatpush.msrb.mxu3 %v719_v27  ;;  %838 = vmatpush.msrb.mxu2 %v719_v27  ;;  %v743_v28 = vmul.f32 %v719_v27, %v719_v27 }
 0x3e0   : > { %735 = vmatpush.msrb.mxu3 %v718_v26  ;;  %758 = vmatpush.msrb.mxu1 %v743_v28 }
 0x3e1   : > { %839 = vmatpush.msrb.mxu2 %v718_v26 }
 0x3e2   : > { %759 = vmatpush.msrb.mxu1 %v742_v30 }
 0x3e3   : > { %v710_v32 = vpop.permute.xlu0 %709 }
 0x3e4   : > { %v717_v35 = vadd.f32 %v710_v32, %v705_v31 }
 0x3e6   : > { %736 = vmatpush.msrb.mxu3 %v717_v35  ;;  %840 = vmatpush.msrb.mxu2 %v717_v35  ;;  %v741_v37 = vmul.f32 %v717_v35, %v717_v35 }
 0x3e7   : > { %951 = vmatmul.msk.f32.vlgmr.msrb.gmra.mxu3 %vm354_vm6, %v1139_v39  ;;  %953 = vmatmul.msk.f32.vlgmr.msrb.gmra.mxu2 %vm354_vm6, %v821_v46 }
 0x3e8   : > { %760 = vmatpush.msrb.mxu1 %v741_v37 }
 0x3e9   : > { %952 = vmatmul.msk.f32.vlgmr.msrb.gmra.mxu1 %vm354_vm6, %v1139_v39  ;;  %v1154_v39 = vmov 3584.0  }
 0x3ea   : > { %1069 = vrcp.f32 %v1154_v39 }
 0x3f0   : > { %v1070_v47 = vpop.eup %1069 }
 0x3f1   : > { %v777_v48 = vmul.f32 3584.0, %v1070_v47  ;;  %vm781_vm12 = vweird.f32 %v1070_v47 }
 0x3f3   : > { %v778_v52 = vsub.f32 1.0, %v777_v48 }
 0x3f5   : > { %v779_v57 = vmul.f32 %v1070_v47, %v778_v52 }
 0x3f7   : > { %v780_v55 = vadd.f32 %v1070_v47, %v779_v57 }
 0x3f9   : > { %v782_v60 = vsel %vm781_vm12, %v1070_v47, %v780_v55 }
 0x466   : > { %v762_v40 = vpop.f32.mrf.mxu1 }
 0x467   : > { %v785_v41 = vmul.f32 %v762_v40, %v255_v38 }
 0x469   : > { %v786_v42 = vsel %vm403_vm7, %v785_v41, 0.0 }
 0x46a   : > { %v738_v43 = vpop.f32.mrf.mxu3  ;;  %787 = vadd.xlane.f32.xlu1 %v786_v42  ;;  %v842_v16 = vpop.f32.mrf.mxu2 }
 0x46b   : > { %v765_v44 = vmul.f32 %v738_v43, %v255_v38 }
 0x46d   : > { %v766_v45 = vsel %vm403_vm7, %v765_v44, 0.0 }
 0x46e   : > { %767 = vadd.xlane.f32.xlu2 %v766_v45 }
 0x4dd   : > { %v788_v49 = vpop.xlane.xlu1 %787 }
 0x4de   : > { %v789_v50 = vrot.slane %v788_v49, 4 }
 0x4e0   : > { %v790_v51 = vadd.f32 %v789_v50, %v788_v49 }
 0x4e1   : > { %v768_v53 = vpop.xlane.xlu2 %767 }
 0x4e2   : > { %v791_v54 = vrot.slane %v790_v51, 2  ;;  %v769_v8 = vrot.slane %v768_v53, 4 }
 0x4e4   : > { %v770_v56 = vadd.f32 %v769_v8, %v768_v53  ;;  %v792_v34 = vadd.f32 %v791_v54, %v790_v51 }
 0x4e6   : > { %v771_v33 = vrot.slane %v770_v56, 2  ;;  %v793_v2 = vrot.slane %v792_v34, 1 }
 0x4e8   : > { %v772_v36 = vadd.f32 %v771_v33, %v770_v56  ;;  %v794_v21 = vadd.f32 %v793_v2, %v792_v34 }
 0x4ea   : > { %v773_v59 = vrot.slane %v772_v36, 1 }
 0x4ec   : > { %v774_v61 = vadd.f32 %v773_v59, %v772_v36 }
 0x4ee   : > { %967 = vpush %v774_v61 }
 0x4ef   : > { %969 = vpush %v782_v60 }
 0x4f0   : > { %971 = vpush %v794_v21 }
 0x51f   : > { %s968_s11 = spop %967 }
 0x520   : > { %s970_s12 = spop %969 }
 0x521   : > { %s784_s13 = smul.f32 %s970_s12, %s968_s11  ;;  %s972_s15 = spop %971 }
 0x522   : > { %s804_s16 = smul.f32 %s972_s15, %s970_s12  ;;  %s942_s11 = sshll.u32 %s240_s10, 2 }
 0x523   : > { %s805_s17 = smul.f32 %s784_s13, %s784_s13  ;;  %s955_s12 = sshll.u32 %s1211_s25, 2 }
 0x525   : > { %s806_s18 = ssub.f32 %s804_s16, %s805_s17  ;;  %s874_s17 = scalar_lea.hbm %s1443_s6, %s955_s12 }
 0x527   : > { %s807_s19 = smax.f32 %s1141_s9, %s806_s18  ;;  %s242_s18 = scalar_lea.vmem [#allocation2], %s942_s11 }
 0x528   : > { %s808_s20 = sadd.f32 1e-05, %s807_s19  ;;  %s876_s19 = sshll.u32 %s242_s18, 4  ;;  %s877_s19 = int_to_ptr.vmem [resolvable:$true] %s876_s19 }
 0x52a   : > { %v809_v62 = vstv %s808_s20 }
 0x52b   : > { %1071 = vrsqrt.f32 %v809_v62  ;;  %vm816_vm14 = vweird.f32 %v809_v62 }
 0x531   : > { %v1072_v63 = vpop.eup %1071 }
 0x532   : > { %v811_v1 = vmul.f32 %v1072_v63, %v809_v62  ;;  %vm817_vm13 = vweird.f32 %v1072_v63 }
 0x533   : > { %vm818_vm15 = vmor %vm816_vm14, %vm817_vm13 }
 0x534   : > { %v812_v5 = vmul.f32 %v1072_v63, %v811_v1 }
 0x536   : > { %v813_v6 = vmul.f32 0.5, %v812_v5 }
 0x538   : > { %v814_v9 = vsub.f32 1.5, %v813_v6 }
 0x53a   : > { %v815_v10 = vmul.f32 %v1072_v63, %v814_v9 }
 0x53c   : > { %v819_v11 = vsel %vm818_vm15, %v1072_v63, %v815_v10 }
 0x53d   : > { %973 = vpush %v819_v11 }
 0x56e   : > { %s974_s26 = spop %973 }
 0x56f   : > { %s846_s9 = smul.f32 %s974_s26, %s784_s13  ;;  %v854_v15 = vstv %s974_s26  ;;  %s878_s13 = sshll.u32 %s874_s17, 4  ;;  %s879_s13 = int_to_ptr.hbm [resolvable:$true] %s878_s13 }
 0x570   : > { %v855_v17 = vmul.f32 %v854_v15, %v842_v16  ;;  %s1087_s20 = sshra.s32 %s879_s13, 4  ;;  %s1088_s20 = int_to_ptr.hbm [resolvable:$true] %s1087_s20 }
 0x571   : > { %v847_v12 = vstv %s846_s9  ;;  %s1089_s25 = scalar_lea.hbm %s1088_s20, 4  ;;  %p1094_p0 = scmp.lt.s32.totalorder %s1088_s20, %s1443_s6 }
 0x572   : > { %v848_v4 = vmul.f32 %v847_v12, %v845_v3  ;;  %p1090_p11 = scmp.ne.s32.totalorder %s1088_s20, %s1089_s25  ;;  %p1095_p1 = scmp.lt.s32.totalorder %s1093_s29, %s1089_s25 }
 0x574   : > { %850 = vrot.lane.b32.xlu0 %v848_v4, %s1149_s14  ;;  %s864_s14 = scalar_lea.sflag [#allocation3], %s240_s10  ;;  %p1091_p12 = pnand %p1090_p11, %p1228_p5 }
 0x575   : > { %p1096_p2 = por %p1095_p1, %p1094_p0 }
 0x576   : > { %p1092_p13 = pneg %p1091_p12 }
 0x578   : > { %p1097_p3 = pnand %p1096_p2, %p1092_p13 }
 0x5e6   : > { %v851_v13 = vpop.permute.xlu0 %850 }
 0x5e7   : > { %v853_v7 = vsub.f32 %v845_v3, %v851_v13 }
 0x5e9   : > { %858 = vperm.xlu0 %1062, %v853_v7  }
 0x65b   : > { %v859_v18 = vpop.permute.xlu0 %858 }
 0x65c   : > { %v861_v58 = vadd.f32 %v859_v18, %v855_v17 }
 0x65e   : > { %862 = vst [vmem:[%s242_s18] sm:$0xf] %v861_v58 }
 0x65f   : > { %1100 = shalt.err (!%p1097_p3)
}
 0x660   : > { %975 = dma.vmem_to_hbm [thread:$0]  (%p1228_p5), %s877_s19, 64, %s879_s13, %s864_s14  }
 0x661 PF: > { %p981_p4 = scmp.ge.s32.totalorder %s1135_s24, 2  ;;  %s890_s10 = sand.u32 1, %s1123_s21  }
 0x662   : > { %s891_s12 = scalar_lea.sflag [#allocation3], %s890_s10 }
 0x663   : > { %p978_p7 = pnand %p981_p4, %p1232_p6 }
 0x665   : > { %p979_p8 = pneg %p978_p7 }
 0x667   : > { %1118 = dma.done.wait (%p979_p8), %s891_s12, 64  }
 0x668   : > { %1120 = vsyncadd (%p979_p8), %s891_s12, 4294967232  ;;  %p16_p9 = scmp.ge.s32.totalorder %s1215_s27, 4   ;;  %s1446_s21 = smov %s1127_s22 }
 0x669   : > { %s1447_s22 = smov %s1131_s23  ;;  %s1448_s23 = smov %s1226_s30 }
 0x66a   : > { %s1449_s24 = smov %s1215_s27  ;;  %18 = sbr.rel (!%p16_p9) target bundleno = 3 (0x3), region = 79 }
 0x66f   :  { %897 = vsyncpa [#allocation3], 1 }
 0x670   :  { %899 = vsyncpa [#allocation3 + $0x1], 1 }

</bundles_post_ra>
